<compile_context>
chip_gen: v7x
topology: tpu7x:2x2x1
jax: 0.10.0
libtpu: 0.0.40
codegen_flags: <defaults>
</compile_context>

<pallas_src>
import jax
import jax.numpy as jnp
from jax.experimental import pallas as pl
from jax.experimental.pallas import tpu as pltpu


def _round_up(x, m):
    return (x + m - 1) // m * m


def _cdiv(a, b):
    return -(-a // b)


def svd_linear_kernel(x_ref, vt_ref, ut_ref, b_ref, o_ref):
    # x_ref:  (TILE_M, In)        activation tile (compute dtype)
    # vt_ref: (In, Rp)            (S @ V)^T, rank zero-padded to Rp
    # ut_ref: (Rp, Op)            U^T, Out zero-padded to Op
    # b_ref:  (1, Op)             bias, f32
    # o_ref:  (TILE_M, Op)
    h = jnp.dot(x_ref[...], vt_ref[...], preferred_element_type=jnp.float32)
    out = jnp.dot(h.astype(ut_ref.dtype), ut_ref[...],
                  preferred_element_type=jnp.float32)
    out = out + b_ref[...]               # bias epilogue in f32
    o_ref[...] = out.astype(o_ref.dtype)


def svd_linear(x, w_v, w_s, w_u, bias, *, compute_dtype=None, tile_m_max=512):
    """x: (..., in_features). w_v: (rank, In), w_s: (rank, rank), w_u: (Out, rank)."""
    in_features = x.shape[-1]
    out_features = w_u.shape[0]
    rank = w_v.shape[0]
    lead_shape = x.shape[:-1]
    out_dtype = x.dtype
    if compute_dtype is None:
        compute_dtype = x.dtype

    # ---- one-time wrapper-side weight prep (plain JAX, constant-foldable) ----
    # Fold the diag(S) layer into V (exact for any S matrix).
    w_v_folded = w_s @ w_v                                   # (rank, In)
    rank_pad = _round_up(rank, 128)
    out_pad = _round_up(out_features, 128)

    vt = jnp.zeros((in_features, rank_pad), compute_dtype)
    vt = vt.at[:, :rank].set(w_v_folded.T.astype(compute_dtype))
    ut = jnp.zeros((rank_pad, out_pad), compute_dtype)
    ut = ut.at[:rank, :out_features].set(w_u.T.astype(compute_dtype))
    b2 = jnp.zeros((1, out_pad), jnp.float32)
    b2 = b2.at[0, :out_features].set(bias.astype(jnp.float32))

    # ---- activation layout ----
    x2d = x.reshape(-1, in_features).astype(compute_dtype)
    m = x2d.shape[0]

    # ---- pick an M tile that fits a conservative VMEM budget (v7x-safe) ----
    budget = 24 * 1024 * 1024
    tile_m = min(tile_m_max, _round_up(m, 8))

    def _working_set(t):
        # double-buffered x/out tiles + (double-buffered) resident weights, f32 worst case
        return (2 * t * (in_features + out_pad)
                + 2 * (in_features * rank_pad + rank_pad * out_pad + out_pad)) * 4

    while tile_m > 8 and _working_set(tile_m) > budget:
        tile_m = max(8, (tile_m // 2) // 8 * 8)

    # Re-balance the tile over the grid so padding waste is < 8 rows/tile
    # (keeps tile_m <= previous value, so the VMEM fit above still holds).
    num_tiles = _cdiv(_round_up(m, 8), tile_m)
    tile_m = _round_up(_cdiv(m, num_tiles), 8)
    m_pad = num_tiles * tile_m
    if m_pad != m:
        x2d = jnp.pad(x2d, ((0, m_pad - m), (0, 0)))
    grid = (num_tiles,)

    itemsize = jnp.dtype(compute_dtype).itemsize
    cost = pl.CostEstimate(
        flops=2 * m_pad * rank_pad * (in_features + out_pad),
        transcendentals=0,
        bytes_accessed=(x2d.size * itemsize
                        + m_pad * out_pad * jnp.dtype(out_dtype).itemsize
                        + vt.size * itemsize + ut.size * itemsize + b2.size * 4),
    )

    out2d = pl.pallas_call(
        svd_linear_kernel,
        out_shape=jax.ShapeDtypeStruct((m_pad, out_pad), out_dtype),
        grid_spec=pl.GridSpec(
            grid=grid,
            in_specs=[
                pl.BlockSpec((tile_m, in_features), lambda i: (i, 0)),    # streamed
                pl.BlockSpec((in_features, rank_pad), lambda i: (0, 0)),  # resident
                pl.BlockSpec((rank_pad, out_pad), lambda i: (0, 0)),      # resident
                pl.BlockSpec((1, out_pad), lambda i: (0, 0)),             # resident
            ],
            out_specs=pl.BlockSpec((tile_m, out_pad), lambda i: (i, 0)),
        ),
        compiler_params=pltpu.CompilerParams(
            dimension_semantics=("parallel",),         # megacore-shardable on v7x
            vmem_limit_bytes=32 * 1024 * 1024,         # headroom on v7x's 64 MiB
        ),
        cost_estimate=cost,
    )(x2d, vt, ut, b2)

    out2d = out2d[:m, :out_features]
    return out2d.reshape(*lead_shape, out_features)


if __name__ == "__main__":
    key = jax.random.PRNGKey(0)
    k_w, k_b, k_x = jax.random.split(key, 3)

    # Small shapes consistent with the module: Linear(in=32, out=32), rank=8,
    # applied to a (batch=2, seq=8, hidden=32) activation.
    in_features, out_features, rank = 32, 32, 8
    batch, seq = 2, 8

    weight = jax.random.normal(k_w, (out_features, in_features), jnp.float32) * 0.1
    bias = jax.random.normal(k_b, (out_features,), jnp.float32) * 0.1

    # SVD setup (glue, plain JAX — mirrors torch.linalg.svd in __init__).
    u, s, vh = jnp.linalg.svd(weight, full_matrices=False)
    w_u = u[:, :rank]                 # (out_features, rank)
    w_s = jnp.diag(s[:rank])          # (rank, rank)
    w_v = vh[:rank]                   # (rank, in_features)

    x = jax.random.normal(k_x, (batch, seq, in_features), jnp.float32)

    # Reference (pure JAX, exact module semantics).
    ref = ((x @ w_v.T) @ w_s.T) @ w_u.T + bias

    # f32 path: exact module semantics.
    out = jax.block_until_ready(svd_linear(x, w_v, w_s, w_u, bias))
    assert out.shape == (batch, seq, out_features)
    assert jnp.allclose(out, ref, atol=1e-4, rtol=1e-4)

    # bf16 MXU-input path (f32 accumulation, f32 bias epilogue).
    out_bf16 = jax.block_until_ready(
        svd_linear(x, w_v, w_s, w_u, bias, compute_dtype=jnp.bfloat16))
    assert out_bf16.shape == (batch, seq, out_features)
    assert jnp.allclose(out_bf16, ref, atol=5e-2, rtol=5e-2)

    print("KERNEL_OK")
</pallas_src>

<mosaic_0001>
module attributes {stable_mosaic.version = 11 : i64} {
  func.func @svd_linear_kernel(%arg0: i32, %arg1: memref<16x32xf32, #tpu.memory_space<vmem>>, %arg2: memref<32x128xf32, #tpu.memory_space<vmem>>, %arg3: memref<128x128xf32, #tpu.memory_space<vmem>>, %arg4: memref<1x128xf32, #tpu.memory_space<vmem>>, %arg5: memref<16x128xf32, #tpu.memory_space<vmem>>) attributes {dimension_semantics = [#tpu.dimension_semantics<parallel>], iteration_bounds = array<i64: 1>, scalar_prefetch = 0 : i64, scratch_operands = 0 : i64, tpu.core_type = #tpu.core_type<tc>, window_params = [{transform_indices = @transform_0, window_bounds = array<i64: 16, 32>}, {pipeline_mode = #tpu.pipeline_mode<synchronous>, transform_indices = @transform_1, window_bounds = array<i64: 32, 128>}, {pipeline_mode = #tpu.pipeline_mode<synchronous>, transform_indices = @transform_2, window_bounds = array<i64: 128, 128>}, {pipeline_mode = #tpu.pipeline_mode<synchronous>, transform_indices = @transform_3, window_bounds = array<i64: 1, 128>}, {transform_indices = @transform_4, window_bounds = array<i64: 16, 128>}]} {
    %c0 = arith.constant 0 : index
    %c0_0 = arith.constant 0 : index
    %0 = vector.load %arg1[%c0, %c0_0] : memref<16x32xf32, #tpu.memory_space<vmem>>, vector<16x32xf32>
    %c0_1 = arith.constant 0 : index
    %c0_2 = arith.constant 0 : index
    %1 = vector.load %arg2[%c0_1, %c0_2] : memref<32x128xf32, #tpu.memory_space<vmem>>, vector<32x128xf32>
    %cst = arith.constant dense<0.000000e+00> : vector<16x128xf32>
    %2 = tpu.matmul %0, %1, %cst {dimension_numbers = #tpu.dot_dimension_numbers<[1], [0], [0], [1], [0, 0, 1, 1], [], []>} : vector<16x32xf32>, vector<32x128xf32>, vector<16x128xf32> -> vector<16x128xf32>
    %c0_3 = arith.constant 0 : index
    %c0_4 = arith.constant 0 : index
    %3 = vector.load %arg3[%c0_3, %c0_4] : memref<128x128xf32, #tpu.memory_space<vmem>>, vector<128x128xf32>
    %cst_5 = arith.constant dense<0.000000e+00> : vector<16x128xf32>
    %4 = tpu.matmul %2, %3, %cst_5 {dimension_numbers = #tpu.dot_dimension_numbers<[1], [0], [0], [1], [0, 0, 1, 1], [], []>} : vector<16x128xf32>, vector<128x128xf32>, vector<16x128xf32> -> vector<16x128xf32>
    %c0_6 = arith.constant 0 : index
    %c0_7 = arith.constant 0 : index
    %5 = vector.load %arg4[%c0_6, %c0_7] : memref<1x128xf32, #tpu.memory_space<vmem>>, vector<1x128xf32>
    %6 = vector.broadcast %5 : vector<1x128xf32> to vector<16x128xf32>
    %7 = arith.addf %4, %6 : vector<16x128xf32>
    %c0_8 = arith.constant 0 : index
    %c0_9 = arith.constant 0 : index
    %8 = vector.load %arg5[%c0_8, %c0_9] : memref<16x128xf32, #tpu.memory_space<vmem>>, vector<16x128xf32>
    tpu.vector_store %arg5[%c0_8, %c0_9], %7 {strides = array<i32>} : memref<16x128xf32, #tpu.memory_space<vmem>>, vector<16x128xf32>,
    return
  }
  func.func @transform_0(%arg0: i32) -> (i32, i32) {
    %c0_i32 = arith.constant 0 : i32
    %c0_i32_0 = arith.constant 0 : i32
    return %arg0, %c0_i32 : i32, i32
  }
  func.func @transform_1(%arg0: i32) -> (i32, i32) {
    %c0_i32 = arith.constant 0 : i32
    %c0_i32_0 = arith.constant 0 : i32
    %c0_i32_1 = arith.constant 0 : i32
    return %c0_i32, %c0_i32_0 : i32, i32
  }
  func.func @transform_2(%arg0: i32) -> (i32, i32) {
    %c0_i32 = arith.constant 0 : i32
    %c0_i32_0 = arith.constant 0 : i32
    %c0_i32_1 = arith.constant 0 : i32
    return %c0_i32, %c0_i32_0 : i32, i32
  }
  func.func @transform_3(%arg0: i32) -> (i32, i32) {
    %c0_i32 = arith.constant 0 : i32
    %c0_i32_0 = arith.constant 0 : i32
    %c0_i32_1 = arith.constant 0 : i32
    return %c0_i32, %c0_i32_0 : i32, i32
  }
  func.func @transform_4(%arg0: i32) -> (i32, i32) {
    %c0_i32 = arith.constant 0 : i32
    %c0_i32_0 = arith.constant 0 : i32
    return %arg0, %c0_i32 : i32, i32
  }
}

</mosaic_0001>

<bundles_post_ra>
// kernel: tpu_custom_call.1
= control target key start
LH: loop header
LB: loop body
LE: loop exit
PB: predicated region body
PF: predicated region fallthrough
CT: control target
= control target key end

     0   :  { %9 = vsyncpa [#allocation3], 0  ;;  %s581_s0 = inlined_call_operand.hbm [shape: f32[16,32], index: 0, kind: input, shape index: {}]   ;;  %s582_s1 = inlined_call_operand.hbm [shape: f32[32,128], index: 1, kind: input, shape index: {}]   ;;  %s583_s2 = inlined_call_operand.hbm [shape: f32[128,128], index: 2, kind: input, shape index: {}]   ;;  %s584_s3 = inlined_call_operand.vmem [shape: f32[1,128], index: 3, kind: input, shape index: {}]   ;;  %s585_s4 = inlined_call_operand.hbm [shape: f32[16,128], index: 4, kind: output, shape index: {}]  }
   0x1   :  { %10 = vsyncpa [#allocation6], 0 }
   0x2   :  { %11 = vsyncpa [#allocation4], 0  ;;  %s478_s15 = smov [#allocation5]   ;;  %s479_s17 = smov [#allocation2]  }
   0x3   :  { %s29_s16 = sshll.u32 %s478_s15, 4  ;;  %s17_s18 = sshll.u32 %s479_s17, 4  ;;  %s30_s16 = int_to_ptr.vmem [resolvable:$true] %s29_s16  ;;  %s509_s18 = int_to_ptr.vmem [resolvable:$true] %s17_s18 }
   0x4   :  { %s384_s21 = scalar_lea.hbm %s582_s1, 512 }
   0x5   :  { %p385_p0 = scmp.ne.s32.totalorder %s582_s1, %s384_s21  ;;  %p388_p1 = scmp.lt.u32.totalorder %s384_s21, %s582_s1 }
   0x7   :  { %p390_p2 = pnand %p388_p1, %p385_p0 }
   0x9   :  { %393 = shalt.err (!%p390_p2)
}
   0xa   :  { %s394_s26 = scalar_lea.vmem %s30_s16, 512  ;;  %p399_p4 = scmp.lt.s32.totalorder %s30_s16, %s30_s16 }
   0xb   :  { %p395_p3 = scmp.ne.s32.totalorder %s30_s16, %s394_s26  ;;  %p400_p5 = scmp.lt.s32.totalorder %s394_s26, %s394_s26 }
   0xd   :  { %p401_p6 = por %p400_p5, %p399_p4 }
   0xf   :  { %p402_p7 = pnand %p401_p6, %p395_p3 }
  0x11   :  { %405 = shalt.err (!%p402_p7)
}
  0x12   :  { %s480_s27 = smov 128   ;;  %s481_s28 = smov 8  }
  0x13   :  { %35 = dma.hbm_to_vmem [thread:$0]  %s582_s1, 512, %s30_s16, [#allocation6], %s480_s27, %s480_s27, %s481_s28  }
  0x14   :  { %s406_s7 = scalar_lea.hbm %s581_s0, 256 }
  0x15   :  { %p407_p8 = scmp.ne.s32.totalorder %s581_s0, %s406_s7  ;;  %p410_p9 = scmp.lt.u32.totalorder %s406_s7, %s581_s0 }
  0x17   :  { %p412_p10 = pnand %p410_p9, %p407_p8 }
  0x19   :  { %415 = shalt.err (!%p412_p10)
}
  0x1a   :  { %s416_s12 = scalar_lea.vmem %s509_s18, 256  ;;  %p421_p12 = scmp.lt.s32.totalorder %s509_s18, %s509_s18 }
  0x1b   :  { %p417_p11 = scmp.ne.s32.totalorder %s509_s18, %s416_s12  ;;  %p422_p13 = scmp.lt.s32.totalorder %s416_s12, %s416_s12 }
  0x1d   :  { %p423_p0 = por %p422_p13, %p421_p12 }
  0x1f   :  { %p424_p1 = pnand %p423_p0, %p417_p11 }
  0x21   :  { %427 = shalt.err (!%p424_p1)
}
  0x22   :  { %23 = dma.hbm_to_vmem [thread:$0]  %s581_s0, 256, %s509_s18, [#allocation3], %s480_s27, %s480_s27, %s481_s28  }
  0x23   :  { %s482_s14 = smov [#allocation7]   ;;  %s428_s19 = scalar_lea.hbm %s583_s2, 2048 }
  0x24   :  { %s41_s15 = sshll.u32 %s482_s14, 4  ;;  %p429_p2 = scmp.ne.s32.totalorder %s583_s2, %s428_s19  ;;  %s42_s15 = int_to_ptr.vmem [resolvable:$true] %s41_s15 }
  0x25   :  { %p432_p3 = scmp.lt.u32.totalorder %s428_s19, %s583_s2 }
  0x27   :  { %p434_p4 = pnand %p432_p3, %p429_p2 }
  0x29   :  { %437 = shalt.err (!%p434_p4)
}
  0x2a   :  { %s438_s24 = scalar_lea.vmem %s42_s15, 2048  ;;  %p443_p6 = scmp.lt.s32.totalorder %s42_s15, %s42_s15 }
  0x2b   :  { %p439_p5 = scmp.ne.s32.totalorder %s42_s15, %s438_s24  ;;  %p444_p7 = scmp.lt.s32.totalorder %s438_s24, %s438_s24 }
  0x2d   :  { %p445_p8 = por %p444_p7, %p443_p6 }
  0x2f   :  { %p446_p9 = pnand %p445_p8, %p439_p5 }
  0x31   :  { %449 = shalt.err (!%p446_p9)
}
  0x32   :  { %47 = dma.hbm_to_vmem [thread:$0]  %s583_s2, 2048, %s42_s15, [#allocation6], %s480_s27, %s480_s27, %s481_s28  }
  0x33   :  { %472 = dma.done.wait [#allocation3], 256  }
  0x34   :  { %473 = vsyncadd [#allocation3], 4294967040 }
  0x35   :  { %474 = dma.done.wait [#allocation6], 2560  }
  0x36   :  { %475 = vsyncadd [#allocation6], 4294964736  ;;  %vm65_vm0 = vcmask 261120   ;;  %v61_v0 = vld [vmem:[#allocation5] sm:$0xff]  ;;  %v62_v1 = vld [vmem:[#allocation5 + $0x8] sm:$0xff]  ;;  %s483_s26 = smov [#allocation8]  }
  0x37   :  { %v63_v2 = vld [vmem:[#allocation5 + $0x10] sm:$0xff]  ;;  %v338_v3 = vpack.c.bf16 %v62_v1, %v61_v0  ;;  %v64_v4 = vld [vmem:[#allocation5 + $0x18] sm:$0xff]  ;;  %v147_v7 = vld [vmem:[#allocation7] sm:$0xff]  ;;  %s252_s29 = sshll.u32 %s483_s26, 4  ;;  %s253_s29 = int_to_ptr.vmem [resolvable:$true] %s252_s29 }
  0x38   :  { %v59_v5 = vld [vmem:[#allocation2] sm:$0xff]  ;;  %v342_v6 = vpack.c.bf16 %v64_v4, %v63_v2  ;;  %v148_v8 = vld [vmem:[#allocation7 + $0x8] sm:$0xff]  ;;  %v150_v11 = vld [vmem:[#allocation7 + $0x18] sm:$0xff]  ;;  %s450_s30 = scalar_lea.vmem %s253_s29, 256  ;;  %p455_p11 = scmp.lt.s32.totalorder %s253_s29, %s253_s29 }
  0x39   :  { %300 = vmatprep.mubr.msk.f32.mxu0 %vm65_vm0, %v59_v5  ;;  %v149_v9 = vld [vmem:[#allocation7 + $0x10] sm:$0xff]  ;;  %339 = vmatprep.subr.bf16.mxu0 %v338_v3  ;;  %v346_v10 = vpack.c.bf16 %v148_v8, %v147_v7  ;;  %v151_v13 = vld [vmem:[#allocation7 + $0x20] sm:$0xff]  ;;  %v152_v14 = vld [vmem:[#allocation7 + $0x28] sm:$0xff]  ;;  %p451_p10 = scmp.ne.s32.totalorder %s253_s29, %s450_s30  ;;  %p456_p12 = scmp.lt.s32.totalorder %s450_s30, %s450_s30 }
  0x3a   :  { %341 = vmatpush3.bf16.msra.mxu0 %v338_v3  ;;  %v350_v12 = vpack.c.bf16 %v150_v11, %v149_v9  ;;  %v354_v15 = vpack.c.bf16 %v152_v14, %v151_v13  ;;  %v60_v16 = vld [vmem:[#allocation2 + $0x8] sm:$0xff]  ;;  %v153_v17 = vld [vmem:[#allocation7 + $0x30] sm:$0xff]  ;;  %v155_v20 = vld [vmem:[#allocation7 + $0x40] sm:$0xff] }
  0x3b   :  { %343 = vmatprep.subr.bf16.mxu0 %v342_v6  ;;  %347 = vmatprep.subr.bf16.mxu1 %v346_v10  ;;  %v154_v18 = vld [vmem:[#allocation7 + $0x38] sm:$0xff]  ;;  %v156_v21 = vld [vmem:[#allocation7 + $0x48] sm:$0xff]  ;;  %v157_v23 = vld [vmem:[#allocation7 + $0x50] sm:$0xff]  ;;  %p457_p13 = por %p456_p12, %p455_p11 }
  0x3c   :  { %349 = vmatpush3.bf16.msra.mxu1 %v346_v10  ;;  %v358_v19 = vpack.c.bf16 %v154_v18, %v153_v17  ;;  %v362_v22 = vpack.c.bf16 %v156_v21, %v155_v20  ;;  %v158_v24 = vld [vmem:[#allocation7 + $0x58] sm:$0xff]  ;;  %v159_v26 = vld [vmem:[#allocation7 + $0x60] sm:$0xff]  ;;  %v160_v27 = vld [vmem:[#allocation7 + $0x68] sm:$0xff] }
  0x3d   :  { %351 = vmatprep.subr.bf16.mxu1 %v350_v12  ;;  %v366_v25 = vpack.c.bf16 %v158_v24, %v157_v23  ;;  %v370_v28 = vpack.c.bf16 %v160_v27, %v159_v26  ;;  %v161_v29 = vld [vmem:[#allocation7 + $0x70] sm:$0xff]  ;;  %v162_v30 = vld [vmem:[#allocation7 + $0x78] sm:$0xff]  ;;  %p458_p0 = pnand %p457_p13, %p451_p10 }
  0x3e   :  { %345 = vmatpush3.bf16.msra.mxu0 %v342_v6  ;;  %v374_v31 = vpack.c.bf16 %v162_v30, %v161_v29  ;;  %v267_v34 = vld [vmem:[%s584_s3] ss:$0 sm:$0xff] }
  0x40   :  { %353 = vmatpush3.bf16.msra.mxu1 %v350_v12 }
  0x41   :  { %301 = vmatmul.mubr.msk.f32.vlgmr.msra.gmra.mrb[0].mxu0 %vm65_vm0, %v60_v16  ;;  %355 = vmatprep.subr.bf16.mxu1 %v354_v15 }
  0x44   :  { %357 = vmatpush3.bf16.msra.mxu1 %v354_v15 }
  0x45   :  { %359 = vmatprep.subr.bf16.mxu1 %v358_v19 }
  0x48   :  { %361 = vmatpush3.bf16.msra.mxu1 %v358_v19 }
  0x49   :  { %363 = vmatprep.subr.bf16.mxu1 %v362_v22 }
  0x4c   :  { %365 = vmatpush3.bf16.msra.mxu1 %v362_v22 }
  0x4d   :  { %367 = vmatprep.subr.bf16.mxu1 %v366_v25 }
  0x50   :  { %369 = vmatpush3.bf16.msra.mxu1 %v366_v25 }
  0x51   :  { %371 = vmatprep.subr.bf16.mxu1 %v370_v28 }
  0x54   :  { %373 = vmatpush3.bf16.msra.mxu1 %v370_v28 }
  0x55   :  { %375 = vmatprep.subr.bf16.mxu1 %v374_v31 }
  0x58   :  { %377 = vmatpush3.bf16.msra.mxu1 %v374_v31 }
 0x114   :  { %v302_v32 = vpop.f32.mrb[0].mxu0 }
 0x115   :  { %v138_v33 = vpop.f32.mrb[1].mxu0 }
 0x116   :  { %335 = vmatprep.mubr.f32.mxu1 %v138_v33 }
 0x117   :  { %336 = vmatmul.mubr.f32.vlgmr.msra.gmra.mrb[0].mxu1 %v302_v32 }
 0x1ea   :  { %v337_v35 = vpop.f32.mrb[0].mxu1 }
 0x1eb   :  { %v242_v36 = vadd.f32 %v337_v35, %v267_v34  ;;  %v236_v37 = vpop.f32.mrb[1].mxu1 }
 0x1ec   :  { %v237_v38 = vadd.f32 %v267_v34, %v236_v37 }
 0x1ed   :  { %246 = vst [vmem:[#allocation8 + $0x8] sm:$0xff] %v242_v36 }
 0x1ee   :  { %245 = vst [vmem:[#allocation8] sm:$0xff] %v237_v38 }
 0x1ef   :  { %461 = shalt.err (!%p458_p0)
}
 0x1f0   :  { %s462_s3 = scalar_lea.hbm %s585_s4, 256 }
 0x1f1   :  { %p463_p1 = scmp.ne.s32.totalorder %s585_s4, %s462_s3  ;;  %p466_p2 = scmp.lt.u32.totalorder %s462_s3, %s585_s4 }
 0x1f3   :  { %p468_p3 = pnand %p466_p2, %p463_p1 }
 0x1f5   :  { %471 = shalt.err (!%p468_p3)
}
 0x1f6   :  { %258 = dma.vmem_to_hbm [thread:$0]  %s253_s29, 256, %s585_s4, [#allocation4], %s480_s27, %s480_s27, %s481_s28  }
 0x1f7   :  { %476 = dma.done.wait [#allocation4], 256  }
 0x1f8   :  { %477 = vsyncadd [#allocation4], 4294967040 }
 0x1f9   :  { %262 = vsyncpa [#allocation3], 1 }
 0x1fa   :  { %263 = vsyncpa [#allocation6], 1 }
 0x1fb   :  { %264 = vsyncpa [#allocation4], 1 }

</bundles_post_ra>
